<compile_context>
chip_gen: v5e
topology: v5e:2x2
jax: 0.10.0
libtpu: 0.0.40
codegen_flags: <defaults>
</compile_context>

<pallas_src>
import functools

import jax
import jax.numpy as jnp
from jax import lax
from jax.experimental import pallas as pl
from jax.experimental.pallas import tpu as pltpu

EPS = 1e-5


def _vmem_budget_and_limit():
    """Derive a per-step block budget and the scoped-VMEM limit from the chip."""
    try:
        cap = int(pltpu.get_tpu_info().vmem_capacity_bytes)
        if cap <= 0:
            raise ValueError
    except Exception:  # pragma: no cover - conservative fallback (fits v7x too)
        cap = 64 * 1024 * 1024
    # Leave headroom for Mosaic internal scratch / spills: limit = 3/4 of physical
    # (capped at 100 MiB), block budget = 3/4 of the limit.
    vmem_limit = min((cap * 3) // 4, 100 * 1024 * 1024)
    budget = (vmem_limit * 3) // 4
    return budget, int(vmem_limit)


def _choose_hw_tile(nc, hw, itemsize, budget):
    """Largest lane-aligned spatial tile whose pipelined blocks fit the budget.

    Accounts for sublane padding of the (nc, thw) block and for double-buffered
    input + output blocks (2 * (in + out) per grid step).
    """
    sublane = 8 * max(1, 4 // max(1, itemsize))        # f32: 8, bf16: 16, int8: 32
    nc_pad = ((nc + sublane - 1) // sublane) * sublane
    per_lane = 4 * nc_pad * itemsize                    # 2 bufs x (in + out) per lane
    if per_lane * hw <= budget:
        return hw                                       # whole slab resident -> fast path
    t = min(hw, budget // per_lane)
    t = (t // 128) * 128                                # lane-dense (unmasked vst)
    while t >= 128:
        if hw % t == 0:
            return t
        t -= 128
    # TODO(synk): ragged H*W with no lane-aligned divisor should use a masked short
    # last tile (or wrapper padding); falling back to the full extent relies on the
    # raised vmem limit.
    return hw


def _per_channel_scale_shift(s_nc, q_nc, gb, n, c, inv_m):
    """Fold (N*C,1) sums per channel and return per-row (N*C,1) scale/shift."""
    s_c = s_nc[0:c, :]
    q_c = q_nc[0:c, :]
    for i in range(1, n):                               # tiny, statically unrolled
        s_c = s_c + s_nc[i * c:(i + 1) * c, :]
        q_c = q_c + q_nc[i * c:(i + 1) * c, :]
    mean = s_c * inv_m                                  # (C, 1)
    # NOTE: E[x^2]-mean^2 in f32 can cancel when |mean| >> std over huge reductions;
    # acceptable here, Welford/shifted accumulation would be the robust fix.
    var = q_c * inv_m - mean * mean                     # biased batch variance
    inv_std = lax.rsqrt(var + EPS)
    gamma = gb[:, 0:1]                                  # (C, 1)
    beta = gb[:, 1:2]                                   # (C, 1)
    scale = inv_std * gamma
    shift = beta - mean * scale
    # Replicate per channel -> per row (row order is [n0c0..n0c{C-1}, n1c0, ...]).
    row_scale = jnp.concatenate([scale] * n, axis=0)    # (N*C, 1)
    row_shift = jnp.concatenate([shift] * n, axis=0)    # (N*C, 1)
    return row_scale, row_shift


def _bn_fused_kernel(x_ref, gb_ref, o_ref, *, n, c, inv_m):
    """Single-step path: whole (N*C, HW) slab resident; stats + normalize fused."""
    x = x_ref[...].astype(jnp.float32)                  # (N*C, HW)
    s = jnp.sum(x, axis=1, keepdims=True)               # (N*C, 1) lane reduce
    q = jnp.sum(x * x, axis=1, keepdims=True)           # (N*C, 1)
    gb = gb_ref[...].astype(jnp.float32)                # (C, 2)
    row_scale, row_shift = _per_channel_scale_shift(s, q, gb, n, c, inv_m)
    # Re-read from the VMEM block (cheap) instead of keeping the upcast value live.
    xn = x_ref[...].astype(jnp.float32)
    o_ref[...] = (xn * row_scale + row_shift).astype(o_ref.dtype)


def _bn_two_pass_kernel(x_ref, gb_ref, o_ref, sum_ref, sq_ref, *, n, c, inv_m):
    """Two-pass path over (N*C, thw) tiles.

    grid = (2, n_tiles): axis 0 is the pass (0 = accumulate per-row sum / sum-of-
    squares into f32 scratch, 1 = fold per channel, normalize + affine); axis 1
    tiles the flattened spatial (lane) axis.
    """
    p = pl.program_id(0)
    t = pl.program_id(1)

    @pl.when(jnp.logical_and(p == 0, t == 0))
    def _init():
        sum_ref[...] = jnp.zeros_like(sum_ref)
        sq_ref[...] = jnp.zeros_like(sq_ref)

    @pl.when(p == 0)
    def _accumulate():
        x = x_ref[...].astype(jnp.float32)              # (N*C, thw)
        sum_ref[...] += jnp.sum(x, axis=1, keepdims=True)
        sq_ref[...] += jnp.sum(x * x, axis=1, keepdims=True)
        # Defensive: keep the pinned output block initialized. Under current Pallas
        # writeback semantics it is never flushed during pass 0 (the block index
        # stays 0 until (p=1, t=0) rewrites it with real data), but this makes the
        # kernel robust to a compiler that flushes on the pass boundary.
        o_ref[...] = x_ref[...]

    @pl.when(p == 1)
    def _normalize():
        gb = gb_ref[...].astype(jnp.float32)            # (C, 2)
        row_scale, row_shift = _per_channel_scale_shift(
            sum_ref[...], sq_ref[...], gb, n, c, inv_m)
        x = x_ref[...].astype(jnp.float32)
        o_ref[...] = (x * row_scale + row_shift).astype(o_ref.dtype)


def batchnorm2d_pallas(x_nchw, gamma, beta, *, hw_tile=None):
    """Training-mode BatchNorm2d forward. x_nchw: (N, C, H, W); gamma/beta: (C,)."""
    N, C, H, W = x_nchw.shape
    HW = H * W
    NC = N * C
    # Free, contiguous reshape — no transpose, no extra HBM pass. Channels (and the
    # batch replicas of each channel) land on sublanes, spatial on lanes.
    x2d = x_nchw.reshape(NC, HW)
    gb = jnp.stack([gamma, beta], axis=1)               # (C, 2): [gamma | beta]

    budget, vmem_limit = _vmem_budget_and_limit()
    thw = hw_tile if hw_tile is not None else _choose_hw_tile(
        NC, HW, x_nchw.dtype.itemsize, budget)
    assert HW % thw == 0 and (thw % 128 == 0 or thw == HW), \
        "spatial tile must divide H*W and be lane-aligned"
    inv_m = 1.0 / float(N * HW)

    if thw == HW:
        # Single resident block: one grid step, x read from HBM exactly once.
        kernel = functools.partial(_bn_fused_kernel, n=N, c=C, inv_m=inv_m)
        y2d = pl.pallas_call(
            kernel,
            out_shape=jax.ShapeDtypeStruct((NC, HW), x_nchw.dtype),
            grid_spec=pltpu.PrefetchScalarGridSpec(
                num_scalar_prefetch=0,
                grid=(1,),
                in_specs=[
                    pl.BlockSpec((NC, HW), lambda i: (0, 0)),
                    pl.BlockSpec((C, 2), lambda i: (0, 0)),
                ],
                out_specs=pl.BlockSpec((NC, HW), lambda i: (0, 0)),
            ),
            compiler_params=pltpu.CompilerParams(
                dimension_semantics=("arbitrary",),
                vmem_limit_bytes=vmem_limit,
            ),
        )(x2d, gb)
    else:
        n_tiles = HW // thw
        kernel = functools.partial(_bn_two_pass_kernel, n=N, c=C, inv_m=inv_m)
        y2d = pl.pallas_call(
            kernel,
            out_shape=jax.ShapeDtypeStruct((NC, HW), x_nchw.dtype),
            grid_spec=pltpu.PrefetchScalarGridSpec(
                num_scalar_prefetch=0,
                grid=(2, n_tiles),                      # (pass, spatial tile)
                in_specs=[
                    pl.BlockSpec((NC, thw), lambda p, t: (0, t)),
                    pl.BlockSpec((C, 2), lambda p, t: (0, 0)),
                ],
                # Pass 0 pins the output block index to 0 (no writeback of
                # not-yet-normalized data); pass 1 tracks the spatial tile.
                out_specs=pl.BlockSpec((NC, thw), lambda p, t: (0, p * t)),
                scratch_shapes=[
                    pltpu.VMEM((NC, 1), jnp.float32),   # per-row sum
                    pltpu.VMEM((NC, 1), jnp.float32),   # per-row sum of squares
                ],
            ),
            compiler_params=pltpu.CompilerParams(
                dimension_semantics=("arbitrary", "arbitrary"),
                vmem_limit_bytes=vmem_limit,
            ),
        )(x2d, gb)

    return y2d.reshape(N, C, H, W)


def batchnorm2d_ref(x_nchw, gamma, beta):
    mean = jnp.mean(x_nchw, axis=(0, 2, 3), keepdims=True)
    var = jnp.mean((x_nchw - mean) ** 2, axis=(0, 2, 3), keepdims=True)
    return (x_nchw - mean) * lax.rsqrt(var + EPS) * gamma[None, :, None, None] \
        + beta[None, :, None, None]


if __name__ == "__main__":
    key = jax.random.PRNGKey(0)
    kx, kg, kb, kx2 = jax.random.split(key, 4)

    N, C, H, W = 2, 4, 16, 16
    x = jax.random.normal(kx, (N, C, H, W), dtype=jnp.float32)

    # PyTorch default init is gamma=1, beta=0; perturb deterministically so the
    # affine path is actually exercised.
    gamma = 1.0 + 0.1 * jax.random.normal(kg, (C,), dtype=jnp.float32)
    beta = 0.1 * jax.random.normal(kb, (C,), dtype=jnp.float32)

    # Fast (single resident block) path — this is what the test shape uses.
    out = jax.block_until_ready(batchnorm2d_pallas(x, gamma, beta))
    ref = batchnorm2d_ref(x, gamma, beta)
    assert out.shape == (N, C, H, W)
    assert jnp.allclose(out, ref, atol=1e-4, rtol=1e-4), "fast-path mismatch vs reference"

    # Also exercise the scalable two-pass path by forcing a small spatial tile.
    x2 = jax.random.normal(kx2, (2, 4, 32, 32), dtype=jnp.float32)
    out2 = jax.block_until_ready(batchnorm2d_pallas(x2, gamma, beta, hw_tile=256))
    ref2 = batchnorm2d_ref(x2, gamma, beta)
    assert jnp.allclose(out2, ref2, atol=1e-4, rtol=1e-4), "two-pass mismatch vs reference"

    print("KERNEL_OK")
</pallas_src>

<mosaic_0001>
module attributes {stable_mosaic.version = 11 : i64} {
  func.func @_bn_fused_kernel(%arg0: i32, %arg1: memref<8x256xf32, #tpu.memory_space<vmem>>, %arg2: memref<4x2xf32, #tpu.memory_space<vmem>>, %arg3: memref<8x256xf32, #tpu.memory_space<vmem>>) attributes {dimension_semantics = [#tpu.dimension_semantics<arbitrary>], iteration_bounds = array<i64: 1>, scalar_prefetch = 0 : i64, scratch_operands = 0 : i64, tpu.core_type = #tpu.core_type<tc>, window_params = [{pipeline_mode = #tpu.pipeline_mode<synchronous>, transform_indices = @transform_0, window_bounds = array<i64: 8, 256>}, {pipeline_mode = #tpu.pipeline_mode<synchronous>, transform_indices = @transform_1, window_bounds = array<i64: 4, 2>}, {pipeline_mode = #tpu.pipeline_mode<synchronous>, transform_indices = @transform_2, window_bounds = array<i64: 8, 256>}]} {
    %c0 = arith.constant 0 : index
    %c0_0 = arith.constant 0 : index
    %0 = vector.load %arg1[%c0, %c0_0] : memref<8x256xf32, #tpu.memory_space<vmem>>, vector<8x256xf32>
    %cst = arith.constant dense<0.000000e+00> : vector<8xf32>
    %1 = vector.multi_reduction <add>, %0, %cst [1] : vector<8x256xf32> to vector<8xf32>
    %2 = vector.shape_cast %1 : vector<8xf32> to vector<8x1xf32>
    %3 = arith.mulf %0, %0 : vector<8x256xf32>
    %cst_1 = arith.constant dense<0.000000e+00> : vector<8xf32>
    %4 = vector.multi_reduction <add>, %3, %cst_1 [1] : vector<8x256xf32> to vector<8xf32>
    %5 = vector.shape_cast %4 : vector<8xf32> to vector<8x1xf32>
    %c0_2 = arith.constant 0 : index
    %c0_3 = arith.constant 0 : index
    %6 = vector.load %arg2[%c0_2, %c0_3] : memref<4x2xf32, #tpu.memory_space<vmem>>, vector<4x2xf32>
    %7 = vector.extract_strided_slice %2 {offsets = [0, 0], sizes = [4, 1], strides = [1, 1]} : vector<8x1xf32> to vector<4x1xf32>
    %8 = vector.extract_strided_slice %5 {offsets = [0, 0], sizes = [4, 1], strides = [1, 1]} : vector<8x1xf32> to vector<4x1xf32>
    %9 = vector.extract_strided_slice %2 {offsets = [4, 0], sizes = [4, 1], strides = [1, 1]} : vector<8x1xf32> to vector<4x1xf32>
    %10 = arith.addf %7, %9 : vector<4x1xf32>
    %11 = vector.extract_strided_slice %5 {offsets = [4, 0], sizes = [4, 1], strides = [1, 1]} : vector<8x1xf32> to vector<4x1xf32>
    %12 = arith.addf %8, %11 : vector<4x1xf32>
    %cst_4 = arith.constant 0.001953125 : f32
    %13 = vector.broadcast %cst_4 : f32 to vector<4x1xf32>
    %14 = arith.mulf %10, %13 : vector<4x1xf32>
    %cst_5 = arith.constant 0.001953125 : f32
    %15 = vector.broadcast %cst_5 : f32 to vector<4x1xf32>
    %16 = arith.mulf %12, %15 : vector<4x1xf32>
    %17 = arith.mulf %14, %14 : vector<4x1xf32>
    %18 = arith.subf %16, %17 : vector<4x1xf32>
    %cst_6 = arith.constant 9.99999974E-6 : f32
    %19 = vector.broadcast %cst_6 : f32 to vector<4x1xf32>
    %20 = arith.addf %18, %19 : vector<4x1xf32>
    %21 = math.rsqrt %20 : vector<4x1xf32>
    %22 = vector.extract_strided_slice %6 {offsets = [0, 0], sizes = [4, 1], strides = [1, 1]} : vector<4x2xf32> to vector<4x1xf32>
    %23 = vector.extract_strided_slice %6 {offsets = [0, 1], sizes = [4, 1], strides = [1, 1]} : vector<4x2xf32> to vector<4x1xf32>
    %24 = arith.mulf %21, %22 : vector<4x1xf32>
    %25 = arith.mulf %14, %24 : vector<4x1xf32>
    %26 = arith.subf %23, %25 : vector<4x1xf32>
    %27 = tpu.concatenate %24, %24 in 0 : vector<4x1xf32>, vector<4x1xf32> -> vector<8x1xf32>
    %28 = tpu.concatenate %26, %26 in 0 : vector<4x1xf32>, vector<4x1xf32> -> vector<8x1xf32>
    %c0_7 = arith.constant 0 : index
    %c0_8 = arith.constant 0 : index
    %29 = vector.load %arg1[%c0_7, %c0_8] : memref<8x256xf32, #tpu.memory_space<vmem>>, vector<8x256xf32>
    %30 = vector.broadcast %27 : vector<8x1xf32> to vector<8x256xf32>
    %31 = arith.mulf %29, %30 : vector<8x256xf32>
    %32 = vector.broadcast %28 : vector<8x1xf32> to vector<8x256xf32>
    %33 = arith.addf %31, %32 : vector<8x256xf32>
    %c0_9 = arith.constant 0 : index
    %c0_10 = arith.constant 0 : index
    %34 = vector.load %arg3[%c0_9, %c0_10] : memref<8x256xf32, #tpu.memory_space<vmem>>, vector<8x256xf32>
    tpu.vector_store %arg3[%c0_9, %c0_10], %33 {strides = array<i32>} : memref<8x256xf32, #tpu.memory_space<vmem>>, vector<8x256xf32>,
    return
  }
  func.func @transform_0(%arg0: i32) -> (i32, i32) {
    %c0_i32 = arith.constant 0 : i32
    %c0_i32_0 = arith.constant 0 : i32
    %c0_i32_1 = arith.constant 0 : i32
    return %c0_i32, %c0_i32_0 : i32, i32
  }
  func.func @transform_1(%arg0: i32) -> (i32, i32) {
    %c0_i32 = arith.constant 0 : i32
    %c0_i32_0 = arith.constant 0 : i32
    %c0_i32_1 = arith.constant 0 : i32
    return %c0_i32, %c0_i32_0 : i32, i32
  }
  func.func @transform_2(%arg0: i32) -> (i32, i32) {
    %c0_i32 = arith.constant 0 : i32
    %c0_i32_0 = arith.constant 0 : i32
    %c0_i32_1 = arith.constant 0 : i32
    return %c0_i32, %c0_i32_0 : i32, i32
  }
}

</mosaic_0001>

<bundles_post_ra>
// kernel: tpu_custom_call.1
= control target key start
LH: loop header
LB: loop body
LE: loop exit
PB: predicated region body
PF: predicated region fallthrough
CT: control target
= control target key end

     0   :  { %7 = vsyncpa [#allocation3], 0  ;;  %s200_s0 = inlined_call_operand.hbm [shape: f32[8,256], index: 0, kind: input, shape index: {}]   ;;  %s201_s1 = inlined_call_operand.vmem [shape: f32[4,2], index: 1, kind: input, shape index: {}]   ;;  %s202_s2 = inlined_call_operand.hbm [shape: f32[8,256], index: 2, kind: output, shape index: {}]  }
   0x1   :  { %8 = vsyncpa [#allocation4], 0  ;;  %s14_s11 = sshll.u32 %s200_s0, 4  ;;  %s171_s12 = smov [#allocation2]   ;;  %s15_s11 = int_to_ptr.hbm [resolvable:$true] %s14_s11 }
   0x2   :  { %s16_s13 = sshll.u32 %s171_s12, 4  ;;  %s17_s13 = int_to_ptr.vmem [resolvable:$true] %s16_s13 }
   0x3   :  { %19 = dma.hbm_to_vmem [thread:$0]  %s15_s11, 256, %s17_s13, [#allocation3]  }
   0x4   :  { %167 = dma.done.wait [#allocation3], 256  }
   0x5   :  { %168 = vsyncadd [#allocation3], 4294967040  ;;  %v26_v0 = vld [vmem:[#allocation2] sm:$0xff]  ;;  %v27_v1 = vld [vmem:[#allocation2 + $0x8] sm:$0xff]  ;;  %v172_v12 = vmov 0   ;;  %s173_s15 = smov 1  }
   0x6   :  { %v28_v2 = vadd.f32 %v27_v1, %v26_v0  ;;  %v31_v3 = vmul.f32 %v26_v0, %v26_v0  ;;  %v32_v4 = vmul.f32 %v27_v1, %v27_v1  ;;  %114 = vset.pattern.permute.xlu1 %v172_v12  ;;  %v36_v23 = vld [vmem:[%s201_s1] sm:$0xf]  ;;  %vm70_vm3 = vcmask 1043456   ;;  %s175_s1 = smov [#allocation5]   ;;  %s99_s19 = sshll.u32 %s202_s2, 4  ;;  %s100_s19 = int_to_ptr.hbm [resolvable:$true] %s99_s19 }
   0x7   :  { %v174_v30 = vmov 1   ;;  %s97_s16 = sshll.u32 %s175_s1, 4  ;;  %s98_s16 = int_to_ptr.vmem [resolvable:$true] %s97_s16 }
   0x8   :  { %29 = vadd.xlane.f32.xlu0 %v28_v2  ;;  %v33_v5 = vadd.f32 %v32_v4, %v31_v3  ;;  %115 = vset.pattern.permute.xlu2 %v174_v30 }
   0x9   :  { %116 = vset.pattern.permute.xlu0 %v174_v30 }
  0x10   :  { %34 = vadd.xlane.f32.xlu0 %v33_v5 }
  0x7b   :  { %v30_v6 = vpop.xlane.xlu0 %29 }
  0x7c   :  { %v38_v7 = vrot.slane %v30_v6, 4 }
  0x7e   :  { %v40_v8 = vadd.f32 %v38_v7, %v30_v6 }
  0x80   :  { %v45_v10 = vmul.f32 0.001953125, %v40_v8 }
  0x82   :  { %v47_v14 = vmul.f32 %v45_v10, %v45_v10 }
  0x83   :  { %v35_v9 = vpop.xlane.xlu0 %34 }
  0x84   :  { %v42_v11 = vrot.slane %v35_v9, 4 }
  0x86   :  { %v44_v13 = vadd.f32 %v42_v11, %v35_v9 }
  0x88   :  { %v46_v15 = vmul.f32 0.001953125, %v44_v13 }
  0x8a   :  { %v48_v16 = vsub.f32 %v46_v15, %v47_v14 }
  0x8c   :  { %v49_v17 = vadd.f32 1e-05, %v48_v16 }
  0x8e   :  { %117 = vrsqrt.f32 %v49_v17  ;;  %vm56_vm1 = vweird.f32 %v49_v17 }
  0x94   :  { %v118_v18 = vpop.eup %117 }
  0x95   :  { %v51_v19 = vmul.f32 %v118_v18, %v49_v17  ;;  %vm57_vm0 = vweird.f32 %v118_v18 }
  0x96   :  { %vm58_vm2 = vmor %vm56_vm1, %vm57_vm0 }
  0x97   :  { %v52_v20 = vmul.f32 %v118_v18, %v51_v19 }
  0x99   :  { %v53_v21 = vmul.f32 0.5, %v52_v20 }
  0x9b   :  { %v54_v22 = vsub.f32 1.5, %v53_v21 }
  0x9d   :  { %v55_v24 = vmul.f32 %v118_v18, %v54_v22 }
  0x9f   :  { %v59_v25 = vsel %vm58_vm2, %v118_v18, %v55_v24 }
  0xa0   :  { %v60_v26 = vmul.f32 %v59_v25, %v36_v23 }
  0xa2   :  { %v61_v27 = vmul.f32 %v60_v26, %v45_v10  ;;  %v68_v28 = vrot.slane %v60_v26, 4 }
  0xa4   :  { %63 = vrot.lane.b32.xlu1 %v61_v27, %s173_s15  ;;  %v71_v29 = vsel %vm70_vm3, %v60_v26, %v68_v28 }
  0xac   :  { %78 = vperm.xlu1 %114, %v71_v29  }
 0x116   :  { %v64_v31 = vpop.permute.xlu1 %63 }
 0x117   :  { %v66_v32 = vsub.f32 %v36_v23, %v64_v31 }
 0x119   :  { %v73_v33 = vrot.slane %v66_v32, 4 }
 0x11b   :  { %v75_v34 = vsel %vm70_vm3, %v66_v32, %v73_v33 }
 0x11c   :  { %85 = vperm.xlu2 %115, %v75_v34  }
 0x11e   :  { %v79_v35 = vpop.permute.xlu1 %78 }
 0x11f   :  { %v81_v36 = vmul.f32 %v79_v35, %v26_v0  ;;  %v82_v37 = vmul.f32 %v79_v35, %v27_v1 }
 0x176   :  { %v86_v38 = vpop.permute.xlu2 %85 }
 0x177   :  { %v88_v39 = vadd.f32 %v86_v38, %v81_v36  ;;  %v89_v40 = vadd.f32 %v86_v38, %v82_v37 }
 0x179   :  { %90 = vst [vmem:[#allocation5] sm:$0xff] %v88_v39 }
 0x17a   :  { %91 = vst [vmem:[#allocation5 + $0x8] sm:$0xff] %v89_v40 }
 0x17b   :  { %102 = dma.vmem_to_hbm [thread:$0]  %s98_s16, 256, %s100_s19, [#allocation4]  }
 0x17c   :  { %169 = dma.done.wait [#allocation4], 256  }
 0x17d   :  { %170 = vsyncadd [#allocation4], 4294967040 }
 0x17e   :  { %107 = vsyncpa [#allocation3], 1 }
 0x17f   :  { %108 = vsyncpa [#allocation4], 1 }

</bundles_post_ra>
